<compile_context>
chip_gen: v7x
topology: tpu7x:2x2x1
jax: 0.10.0
libtpu: 0.0.40
codegen_flags: <defaults>
</compile_context>

<pallas_src>
import functools

import jax
import jax.numpy as jnp
from jax import lax
from jax.experimental import pallas as pl
from jax.experimental.pallas import tpu as pltpu

LANES = 128
MAX_TILE_ROWS = 4096  # 4096 x 128 x 4B = 2 MiB per f32 block


def _dice_kernel(s_ref, t_ref, o_ref, acc_inter_ref, acc_total_ref, *,
                 smooth, valid_rows, tile_rows):
    i = pl.program_id(0)

    @pl.when(i == 0)
    def _init():
        acc_inter_ref[...] = jnp.zeros_like(acc_inter_ref)
        acc_total_ref[...] = jnp.zeros_like(acc_total_ref)

    s = s_ref[...].astype(jnp.float32)
    t = t_ref[...].astype(jnp.float32)

    # Mask rows past the end of the (row-reshaped) input. `valid_rows` and
    # `tile_rows` are static, so this whole branch disappears when the grid
    # divides evenly (the common case).
    if valid_rows % tile_rows != 0:
        row_ids = i * tile_rows + lax.broadcasted_iota(
            jnp.int32, (tile_rows, LANES), 0)
        in_bounds = row_ids < valid_rows
        s = jnp.where(in_bounds, s, 0.0)
        t = jnp.where(in_bounds, t, 0.0)

    # Lane-preserving partial sums (VPU work that hides under the DMA).
    acc_inter_ref[...] += jnp.sum(s * t, axis=0, keepdims=True)
    acc_total_ref[...] += jnp.sum(s + t, axis=0, keepdims=True)

    @pl.when(i == pl.num_programs(0) - 1)
    def _finalize():
        inter = jnp.sum(acc_inter_ref[...])
        total = jnp.sum(acc_total_ref[...])
        o_ref[0, 0] = 1.0 - (2.0 * inter + smooth) / (total + smooth)


def _sublane_multiple(*dtypes):
    # f32 -> 8, bf16/f16 -> 16, int8/fp8 -> 32.
    mult = 8
    for d in dtypes:
        itemsize = jnp.dtype(d).itemsize
        mult = max(mult, 32 // max(1, itemsize))
    return mult


def dice_loss(s, s_hat, smooth=1.0, max_tile_rows=MAX_TILE_ROWS):
    """Pallas equivalent of LossDice.forward(s, s_hat, smooth)."""
    assert s.shape == s_hat.shape, "s and s_hat must have identical shapes"

    iflat = s.reshape(-1)
    tflat = s_hat.reshape(-1)
    n = iflat.shape[0]

    sub_mult = _sublane_multiple(iflat.dtype, tflat.dtype)
    align = LANES * sub_mult  # <= 4096 elements
    n_pad = ((n + align - 1) // align) * align
    if n_pad != n:
        # Small fallback pad (< align elems) only when the flat size is not
        # already lane/sublane aligned; zeros do not change any of the sums.
        iflat = jnp.pad(iflat, (0, n_pad - n))
        tflat = jnp.pad(tflat, (0, n_pad - n))

    rows = n_pad // LANES                      # multiple of sub_mult
    tile_rows = min(int(max_tile_rows), rows)  # also a multiple of sub_mult
    grid = (pl.cdiv(rows, tile_rows),)

    s2 = iflat.reshape(rows, LANES)
    t2 = tflat.reshape(rows, LANES)

    kernel = functools.partial(
        _dice_kernel,
        smooth=float(smooth),
        valid_rows=rows,
        tile_rows=tile_rows,
    )

    out = pl.pallas_call(
        kernel,
        out_shape=jax.ShapeDtypeStruct((1, 1), jnp.float32),
        grid_spec=pltpu.PrefetchScalarGridSpec(
            num_scalar_prefetch=0,
            grid=grid,
            in_specs=[
                pl.BlockSpec((tile_rows, LANES), lambda i: (i, 0)),
                pl.BlockSpec((tile_rows, LANES), lambda i: (i, 0)),
            ],
            out_specs=pl.BlockSpec(
                (1, 1), lambda i: (0, 0), memory_space=pltpu.SMEM
            ),
            scratch_shapes=[
                pltpu.VMEM((1, LANES), jnp.float32),  # running sum(s * t)
                pltpu.VMEM((1, LANES), jnp.float32),  # running sum(s + t)
            ],
        ),
        compiler_params=pltpu.CompilerParams(
            dimension_semantics=("arbitrary",)
        ),
    )(s2, t2)

    return out[0, 0]


def dice_loss_ref(s, s_hat, smooth=1.0):
    iflat = s.reshape(-1).astype(jnp.float32)
    tflat = s_hat.reshape(-1).astype(jnp.float32)
    inter = jnp.sum(iflat * tflat)
    return 1.0 - (2.0 * inter + smooth) / (jnp.sum(iflat) + jnp.sum(tflat) + smooth)


if __name__ == "__main__":
    key = jax.random.PRNGKey(0)
    k1, k2, k3, k4 = jax.random.split(key, 4)

    # Typical segmentation maps: predicted probabilities and soft targets.
    s = jax.nn.sigmoid(jax.random.normal(k1, (2, 4, 16, 16), dtype=jnp.float32))
    s_hat = jax.nn.sigmoid(jax.random.normal(k2, (2, 4, 16, 16), dtype=jnp.float32))

    loss = dice_loss(s, s_hat, smooth=1.0)
    jax.block_until_ready(loss)
    ref = dice_loss_ref(s, s_hat, smooth=1.0)
    assert jnp.allclose(loss, ref, rtol=1e-5, atol=1e-6), (loss, ref)

    # bf16 streaming path (half the HBM bytes; accumulation stays f32).
    s_bf = s.astype(jnp.bfloat16)
    t_bf = s_hat.astype(jnp.bfloat16)
    loss_bf = dice_loss(s_bf, t_bf, smooth=1.0)
    jax.block_until_ready(loss_bf)
    ref_bf = dice_loss_ref(s_bf, t_bf, smooth=1.0)
    assert jnp.allclose(loss_bf, ref_bf, rtol=1e-5, atol=1e-5), (loss_bf, ref_bf)

    # Non lane-aligned size (exercises the small alignment-pad fallback).
    s_odd = jax.nn.sigmoid(jax.random.normal(k3, (2, 3, 7, 5), dtype=jnp.float32))
    t_odd = jax.nn.sigmoid(jax.random.normal(k4, (2, 3, 7, 5), dtype=jnp.float32))
    loss_odd = dice_loss(s_odd, t_odd, smooth=1.0)
    jax.block_until_ready(loss_odd)
    ref_odd = dice_loss_ref(s_odd, t_odd, smooth=1.0)
    assert jnp.allclose(loss_odd, ref_odd, rtol=1e-5, atol=1e-6), (loss_odd, ref_odd)

    print("KERNEL_OK")
</pallas_src>

<mosaic_0001>
module attributes {stable_mosaic.version = 11 : i64} {
  func.func @_dice_kernel(%arg0: i32, %arg1: memref<16x128xf32, #tpu.memory_space<vmem>>, %arg2: memref<16x128xf32, #tpu.memory_space<vmem>>, %arg3: memref<1x1xf32, #tpu.memory_space<smem>>, %arg4: memref<1x128xf32, #tpu.memory_space<vmem>>, %arg5: memref<1x128xf32, #tpu.memory_space<vmem>>) attributes {dimension_semantics = [#tpu.dimension_semantics<arbitrary>], iteration_bounds = array<i64: 1>, scalar_prefetch = 0 : i64, scratch_operands = 2 : i64, tpu.core_type = #tpu.core_type<tc>, window_params = [{transform_indices = @transform_0, window_bounds = array<i64: 16, 128>}, {transform_indices = @transform_1, window_bounds = array<i64: 16, 128>}, {transform_indices = @transform_2, window_bounds = array<i64: 1, 1>}]} {
    %c0_i32 = arith.constant 0 : i32
    %0 = arith.cmpi eq, %arg0, %c0_i32 : i32
    %1 = arith.extui %0 : i1 to i32
    %c0_i32_0 = arith.constant 0 : i32
    %2 = arith.cmpi ne, %1, %c0_i32_0 : i32
    scf.if %2 {
      %cst_15 = arith.constant 0.000000e+00 : f32
      %20 = vector.broadcast %cst_15 : f32 to vector<1x128xf32>
      %c0_16 = arith.constant 0 : index
      %c0_17 = arith.constant 0 : index
      %21 = vector.load %arg4[%c0_16, %c0_17] : memref<1x128xf32, #tpu.memory_space<vmem>>, vector<1x128xf32>
      tpu.vector_store %arg4[%c0_16, %c0_17], %20 {strides = array<i32>} : memref<1x128xf32, #tpu.memory_space<vmem>>, vector<1x128xf32>,
      %cst_18 = arith.constant 0.000000e+00 : f32
      %22 = vector.broadcast %cst_18 : f32 to vector<1x128xf32>
      %c0_19 = arith.constant 0 : index
      %c0_20 = arith.constant 0 : index
      %23 = vector.load %arg5[%c0_19, %c0_20] : memref<1x128xf32, #tpu.memory_space<vmem>>, vector<1x128xf32>
      tpu.vector_store %arg5[%c0_19, %c0_20], %22 {strides = array<i32>} : memref<1x128xf32, #tpu.memory_space<vmem>>, vector<1x128xf32>,
    } else {
    }
    %c0 = arith.constant 0 : index
    %c0_1 = arith.constant 0 : index
    %3 = vector.load %arg1[%c0, %c0_1] : memref<16x128xf32, #tpu.memory_space<vmem>>, vector<16x128xf32>
    %c0_2 = arith.constant 0 : index
    %c0_3 = arith.constant 0 : index
    %4 = vector.load %arg2[%c0_2, %c0_3] : memref<16x128xf32, #tpu.memory_space<vmem>>, vector<16x128xf32>
    %c0_4 = arith.constant 0 : index
    %c0_5 = arith.constant 0 : index
    %5 = vector.load %arg4[%c0_4, %c0_5] : memref<1x128xf32, #tpu.memory_space<vmem>>, vector<1x128xf32>
    %6 = arith.mulf %3, %4 : vector<16x128xf32>
    %cst = arith.constant dense<0.000000e+00> : vector<128xf32>
    %7 = vector.multi_reduction <add>, %6, %cst [0] : vector<16x128xf32> to vector<128xf32>
    %8 = vector.shape_cast %7 : vector<128xf32> to vector<1x128xf32>
    %9 = arith.addf %5, %8 : vector<1x128xf32>
    %c0_6 = arith.constant 0 : index
    %c0_7 = arith.constant 0 : index
    %10 = vector.load %arg4[%c0_6, %c0_7] : memref<1x128xf32, #tpu.memory_space<vmem>>, vector<1x128xf32>
    tpu.vector_store %arg4[%c0_6, %c0_7], %9 {strides = array<i32>} : memref<1x128xf32, #tpu.memory_space<vmem>>, vector<1x128xf32>,
    %c0_8 = arith.constant 0 : index
    %c0_9 = arith.constant 0 : index
    %11 = vector.load %arg5[%c0_8, %c0_9] : memref<1x128xf32, #tpu.memory_space<vmem>>, vector<1x128xf32>
    %12 = arith.addf %3, %4 : vector<16x128xf32>
    %cst_10 = arith.constant dense<0.000000e+00> : vector<128xf32>
    %13 = vector.multi_reduction <add>, %12, %cst_10 [0] : vector<16x128xf32> to vector<128xf32>
    %14 = vector.shape_cast %13 : vector<128xf32> to vector<1x128xf32>
    %15 = arith.addf %11, %14 : vector<1x128xf32>
    %c0_11 = arith.constant 0 : index
    %c0_12 = arith.constant 0 : index
    %16 = vector.load %arg5[%c0_11, %c0_12] : memref<1x128xf32, #tpu.memory_space<vmem>>, vector<1x128xf32>
    tpu.vector_store %arg5[%c0_11, %c0_12], %15 {strides = array<i32>} : memref<1x128xf32, #tpu.memory_space<vmem>>, vector<1x128xf32>,
    %c0_i32_13 = arith.constant 0 : i32
    %17 = arith.cmpi eq, %arg0, %c0_i32_13 : i32
    %18 = arith.extui %17 : i1 to i32
    %c0_i32_14 = arith.constant 0 : i32
    %19 = arith.cmpi ne, %18, %c0_i32_14 : i32
    scf.if %19 {
      %c0_15 = arith.constant 0 : index
      %c0_16 = arith.constant 0 : index
      %20 = vector.load %arg4[%c0_15, %c0_16] : memref<1x128xf32, #tpu.memory_space<vmem>>, vector<1x128xf32>
      %21 = vector.shape_cast %20 : vector<1x128xf32> to vector<1x1x128xf32>
      %cst_17 = arith.constant dense<0.000000e+00> : vector<1xf32>
      %22 = vector.multi_reduction <add>, %21, %cst_17 [1, 2] : vector<1x1x128xf32> to vector<1xf32>
      %23 = vector.shape_cast %22 : vector<1xf32> to vector<1x1x1xf32>
      %24 = vector.extract %23[0, 0, 0] : f32 from vector<1x1x1xf32>
      %c0_18 = arith.constant 0 : index
      %c0_19 = arith.constant 0 : index
      %25 = vector.load %arg5[%c0_18, %c0_19] : memref<1x128xf32, #tpu.memory_space<vmem>>, vector<1x128xf32>
      %26 = vector.shape_cast %25 : vector<1x128xf32> to vector<1x1x128xf32>
      %cst_20 = arith.constant dense<0.000000e+00> : vector<1xf32>
      %27 = vector.multi_reduction <add>, %26, %cst_20 [1, 2] : vector<1x1x128xf32> to vector<1xf32>
      %28 = vector.shape_cast %27 : vector<1xf32> to vector<1x1x1xf32>
      %29 = vector.extract %28[0, 0, 0] : f32 from vector<1x1x1xf32>
      %cst_21 = arith.constant 2.000000e+00 : f32
      %30 = arith.mulf %cst_21, %24 : f32
      %cst_22 = arith.constant 1.000000e+00 : f32
      %31 = arith.addf %30, %cst_22 : f32
      %cst_23 = arith.constant 1.000000e+00 : f32
      %32 = arith.addf %29, %cst_23 : f32
      %33 = arith.divf %31, %32 : f32
      %cst_24 = arith.constant 1.000000e+00 : f32
      %34 = arith.subf %cst_24, %33 : f32
      %c0_25 = arith.constant 0 : index
      %c0_26 = arith.constant 0 : index
      %35 = memref.load %arg3[%c0_25, %c0_26] : memref<1x1xf32, #tpu.memory_space<smem>>
      memref.store %34, %arg3[%c0_25, %c0_26] : memref<1x1xf32, #tpu.memory_space<smem>>
    } else {
    }
    return
  }
  func.func @transform_0(%arg0: i32) -> (i32, i32) {
    %c0_i32 = arith.constant 0 : i32
    %c0_i32_0 = arith.constant 0 : i32
    return %arg0, %c0_i32 : i32, i32
  }
  func.func @transform_1(%arg0: i32) -> (i32, i32) {
    %c0_i32 = arith.constant 0 : i32
    %c0_i32_0 = arith.constant 0 : i32
    return %arg0, %c0_i32 : i32, i32
  }
  func.func @transform_2(%arg0: i32) -> (i32, i32) {
    %c0_i32 = arith.constant 0 : i32
    %c0_i32_0 = arith.constant 0 : i32
    %c0_i32_1 = arith.constant 0 : i32
    return %c0_i32, %c0_i32_0 : i32, i32
  }
}

</mosaic_0001>

<bundles_post_ra>
// kernel: tpu_custom_call.1
= control target key start
LH: loop header
LB: loop body
LE: loop exit
PB: predicated region body
PF: predicated region fallthrough
CT: control target
= control target key end

     0   :  { %7 = vsyncpa [#allocation5], 0  ;;  %s256_s0 = inlined_call_operand.hbm [shape: f32[16,128], index: 0, kind: input, shape index: {}]   ;;  %s257_s1 = inlined_call_operand.hbm [shape: f32[16,128], index: 1, kind: input, shape index: {}]   ;;  %s258_s2 = inlined_call_operand.hbm [shape: f32[1,1], index: 2, kind: output, shape index: {}]  }
   0x1   :  { %8 = vsyncpa [#allocation8], 0 }
   0x2   :  { %9 = vsyncpa [#allocation6], 0  ;;  %s199_s9 = smov [#allocation4]   ;;  %s139_s13 = scalar_lea.hbm %s256_s0, 256 }
   0x3   :  { %s15_s10 = sshll.u32 %s199_s9, 4  ;;  %p140_p0 = scmp.ne.s32.totalorder %s256_s0, %s139_s13  ;;  %s16_s10 = int_to_ptr.vmem [resolvable:$true] %s15_s10 }
   0x4   :  { %p143_p1 = scmp.lt.u32.totalorder %s139_s13, %s256_s0 }
   0x6   :  { %p145_p2 = pnand %p143_p1, %p140_p0 }
   0x8   :  { %148 = shalt.err (!%p145_p2)
}
   0x9   :  { %s149_s18 = scalar_lea.vmem %s16_s10, 256  ;;  %p154_p4 = scmp.lt.s32.totalorder %s16_s10, %s16_s10 }
   0xa   :  { %p150_p3 = scmp.ne.s32.totalorder %s16_s10, %s149_s18  ;;  %p155_p5 = scmp.lt.s32.totalorder %s149_s18, %s149_s18 }
   0xc   :  { %p156_p6 = por %p155_p5, %p154_p4 }
   0xe   :  { %p157_p7 = pnand %p156_p6, %p150_p3 }
  0x10   :  { %160 = shalt.err (!%p157_p7)
}
  0x11   :  { %s200_s19 = smov 128   ;;  %s201_s20 = smov 8  }
  0x12   :  { %21 = dma.hbm_to_vmem [thread:$0]  %s256_s0, 256, %s16_s10, [#allocation5], %s200_s19, %s200_s19, %s201_s20  }
  0x13   :  { %s202_s23 = smov [#allocation7]   ;;  %s161_s27 = scalar_lea.hbm %s257_s1, 256 }
  0x14   :  { %s27_s24 = sshll.u32 %s202_s23, 4  ;;  %p162_p8 = scmp.ne.s32.totalorder %s257_s1, %s161_s27  ;;  %s28_s24 = int_to_ptr.vmem [resolvable:$true] %s27_s24 }
  0x15   :  { %p165_p9 = scmp.lt.u32.totalorder %s161_s27, %s257_s1 }
  0x17   :  { %p167_p10 = pnand %p165_p9, %p162_p8 }
  0x19   :  { %170 = shalt.err (!%p167_p10)
}
  0x1a   :  { %s171_s4 = scalar_lea.vmem %s28_s24, 256  ;;  %p176_p12 = scmp.lt.s32.totalorder %s28_s24, %s28_s24 }
  0x1b   :  { %p172_p11 = scmp.ne.s32.totalorder %s28_s24, %s171_s4  ;;  %p177_p13 = scmp.lt.s32.totalorder %s171_s4, %s171_s4 }
  0x1d   :  { %p178_p0 = por %p177_p13, %p176_p12 }
  0x1f   :  { %p179_p1 = pnand %p178_p0, %p172_p11 }
  0x21   :  { %182 = shalt.err (!%p179_p1)
}
  0x22   :  { %33 = dma.hbm_to_vmem [thread:$0]  %s257_s1, 256, %s28_s24, [#allocation8], %s200_s19, %s200_s19, %s201_s20  }
  0x23   :  { %193 = dma.done.wait [#allocation5], 256  }
  0x24   :  { %194 = vsyncadd [#allocation5], 4294967040 }
  0x25   :  { %195 = dma.done.wait [#allocation8], 256  }
  0x26   :  { %196 = vsyncadd [#allocation8], 4294967040  ;;  %v203_v0 = vmov 0.0   ;;  %v46_v1 = vld [vmem:[#allocation4] sm:$0xff]  ;;  %v47_v2 = vld [vmem:[#allocation4 + $0x8] sm:$0xff]  ;;  %vm78_vm0 = vcmask 1040384  }
  0x27   :  { %44 = vst [vmem:[#allocation2] sm:$0x1] %v203_v0  ;;  %45 = vst [vmem:[#allocation3] sm:$0x1] %v203_v0  ;;  %v48_v3 = vld [vmem:[#allocation7] sm:$0xff]  ;;  %v49_v4 = vld [vmem:[#allocation7 + $0x8] sm:$0xff] }
  0x28   :  { %v51_v5 = vmul.f32 %v48_v3, %v46_v1  ;;  %v63_v6 = vadd.f32 %v48_v3, %v46_v1  ;;  %v52_v7 = vmul.f32 %v49_v4, %v47_v2  ;;  %v64_v8 = vadd.f32 %v49_v4, %v47_v2  ;;  %s183_s15 = scalar_lea.hbm %s258_s2, 16 }
  0x29   :  { %p184_p2 = scmp.ne.s32.totalorder %s258_s2, %s183_s15  ;;  %p187_p3 = scmp.lt.u32.totalorder %s183_s15, %s258_s2 }
  0x2a   :  { %v53_v9 = vadd.f32 %v52_v7, %v51_v5  ;;  %v65_v10 = vadd.f32 %v64_v8, %v63_v6 }
  0x2b   :  { %p189_p4 = pnand %p187_p3, %p184_p2 }
  0x2c   :  { %v54_v11 = vrot.slane %v53_v9, 4  ;;  %v66_v12 = vrot.slane %v65_v10, 4 }
  0x2e   :  { %v55_v13 = vadd.f32 %v54_v11, %v53_v9  ;;  %v67_v14 = vadd.f32 %v66_v12, %v65_v10  ;;  %v50_v21 = vld [vmem:[#allocation2] sm:$0x1]  ;;  %v62_v22 = vld [vmem:[#allocation3] sm:$0x1] }
  0x30   :  { %v56_v15 = vrot.slane %v55_v13, 2  ;;  %v68_v16 = vrot.slane %v67_v14, 2 }
  0x32   :  { %v57_v17 = vadd.f32 %v56_v15, %v55_v13  ;;  %v69_v18 = vadd.f32 %v68_v16, %v67_v14 }
  0x34   :  { %v58_v19 = vrot.slane %v57_v17, 1  ;;  %v70_v20 = vrot.slane %v69_v18, 1 }
  0x36   :  { %v59_v23 = vadd.f32 %v58_v19, %v57_v17  ;;  %v71_v24 = vadd.f32 %v70_v20, %v69_v18 }
  0x38   :  { %v60_v25 = vadd.f32 %v59_v23, %v50_v21  ;;  %v72_v26 = vadd.f32 %v71_v24, %v62_v22 }
  0x3a   :  { %61 = vst [vmem:[#allocation2] sm:$0x1] %v60_v25  ;;  %73 = vst [vmem:[#allocation3] sm:$0x1] %v72_v26 }
  0x41   :  { %v77_v27 = vld [vmem:[#allocation2] sm:$0x1]  ;;  %v89_v28 = vld [vmem:[#allocation3] sm:$0x1] }
  0x42   :  { %v79_v29 = vsel %vm78_vm0, %v77_v27, 0.0  ;;  %v90_v30 = vsel %vm78_vm0, %v89_v28, 0.0 }
  0x43   :  { %80 = vadd.xlane.f32.xlu0 %v79_v29 }
  0x47   :  { %91 = vadd.xlane.f32.xlu0 %v90_v30 }
  0xd0   :  { %v81_v31 = vpop.xlane.xlu0 %80 }
  0xd1   :  { %v82_v32 = vrot.slane %v81_v31, 4 }
  0xd3   :  { %v83_v33 = vadd.f32 %v82_v32, %v81_v31 }
  0xd4   :  { %v92_v34 = vpop.xlane.xlu0 %91 }
  0xd5   :  { %v84_v35 = vrot.slane %v83_v33, 2  ;;  %v93_v36 = vrot.slane %v92_v34, 4 }
  0xd7   :  { %v94_v37 = vadd.f32 %v93_v36, %v92_v34  ;;  %v85_v38 = vadd.f32 %v84_v35, %v83_v33 }
  0xd9   :  { %v95_v39 = vrot.slane %v94_v37, 2  ;;  %v86_v40 = vrot.slane %v85_v38, 1 }
  0xdb   :  { %v96_v41 = vadd.f32 %v95_v39, %v94_v37  ;;  %v87_v42 = vadd.f32 %v86_v40, %v85_v38 }
  0xdd   :  { %125 = vpush %v87_v42  ;;  %v97_v43 = vrot.slane %v96_v41, 1 }
  0xdf   :  { %v98_v44 = vadd.f32 %v97_v43, %v96_v41 }
  0xe1   :  { %127 = vpush %v98_v44 }
 0x10e   :  { %s126_s1 = spop %125 }
 0x10f   :  { %s100_s8 = smul.f32 2.0, %s126_s1 }
 0x111   :  { %s101_s9 = sadd.f32 1.0, %s100_s8 }
 0x112   :  { %s128_s6 = spop %127 }
 0x113   :  { %s102_s7 = sadd.f32 1.0, %s128_s6 }
 0x115   :  { %v103_v45 = vstv %s102_s7 }
 0x116   :  { %137 = vrcp.f32 %v103_v45 }
 0x120   :  { %v138_v46 = vpop.eup %137 }
 0x121   :  { %129 = vpush %v138_v46 }
 0x152   :  { %s130_s10 = spop %129 }
 0x153   :  { %s106_s11 = smul.f32 %s130_s10, %s101_s9 }
 0x155   :  { %s107_s12 = ssub.f32 1.0, %s106_s11 }
 0x157   :  { %109 = sst [smem:[#allocation9]] %s107_s12 }
 0x158   :  { %192 = shalt.err (!%p189_p4)
}
 0x159   :  { %s204_s20 = smov [#allocation9]  }
 0x15a   :  { %117 = dma.smem_to_hbm %s204_s20, 16, %s258_s2, [#allocation6]  }
 0x15b   :  { %197 = dma.done.wait [#allocation6], 16  }
 0x15c   :  { %198 = vsyncadd [#allocation6], 4294967280 }
 0x15d   :  { %121 = sfence }
 0x15e   :  { %122 = vsyncpa [#allocation5], 1 }
 0x15f   :  { %123 = vsyncpa [#allocation8], 1 }
 0x160   :  { %124 = vsyncpa [#allocation6], 1 }

</bundles_post_ra>
